<compile_context>
chip_gen: v6e
topology: v6e:2x2x1
jax: 0.10.0
libtpu: 0.0.40
codegen_flags: <defaults>
</compile_context>

<pallas_src>
import jax
import jax.numpy as jnp
import numpy as np
from jax.experimental import pallas as pl
from jax.experimental.pallas import tpu as pltpu

EPS = 1e-5  # nn.InstanceNorm2d default


# ----------------------------------------------------------------------------
# Pallas kernel: row-wise InstanceNorm + precomputed affine modulation
# ----------------------------------------------------------------------------
def adain_rows_kernel(x_ref, g1_ref, beta_ref, o_ref):
    # x_ref:    (ROWS, HW)  each row is one (b, c) pair; reduce over HW (lanes)
    # g1_ref:   (ROWS, 1)   precomputed 1 + gamma
    # beta_ref: (ROWS, 1)   precomputed beta
    x = x_ref[...].astype(jnp.float32)
    hw = x.shape[-1]
    inv_hw = jnp.float32(1.0 / hw)

    # One-pass statistics (f32 accumulation), biased variance like InstanceNorm2d.
    s1 = jnp.sum(x, axis=-1, keepdims=True)          # (ROWS, 1)
    s2 = jnp.sum(x * x, axis=-1, keepdims=True)      # (ROWS, 1)
    mean = s1 * inv_hw
    var = jnp.maximum(s2 * inv_hw - mean * mean, 0.0)
    inv_std = jax.lax.rsqrt(var + EPS)                # EUP slot (effectively free)

    # Fold everything into one FMA per element:
    #   out = (1+gamma) * (x - mean) * inv_std + beta = x*scale + shift
    scale = g1_ref[...].astype(jnp.float32) * inv_std   # (ROWS, 1)
    shift = beta_ref[...].astype(jnp.float32) - mean * scale
    o_ref[...] = (x * scale + shift).astype(o_ref.dtype)


def _pick_rows(num_rows, hw, itemsize):
    """Largest row-tile (multiple of 8) that divides num_rows and fits VMEM."""
    vmem_budget = 16 * 1024 * 1024  # 4 double-buffered tiles must stay well under
    if num_rows % 8 != 0:           # 32 MiB scoped default (and v7x's 64 MiB VMEM)
        return num_rows             # full-extent block is always legal
    for rows in (512, 256, 128, 64, 32, 16, 8):
        if rows <= num_rows and num_rows % rows == 0 and 4 * rows * hw * itemsize <= vmem_budget:
            return rows
    return 8


def adain_pallas(x, style, w, b):
    """AdaIN: (1 + gamma) * InstanceNorm2d(x) + beta, [gamma, beta] = style @ w + b.

    x: (B, C, H, W), style: (B, S), w: (S, 2C), b: (2C,)
    """
    B, C, H, W = x.shape
    HW = H * W
    R = B * C

    # --- style affine hoisted out of the kernel (single tiny matmul) ---
    sv = (style.astype(jnp.float32) @ w.astype(jnp.float32)
          + b.astype(jnp.float32)[None, :])                 # (B, 2C)
    g1 = (1.0 + sv[:, :C]).reshape(R, 1)                    # 1 + gamma (torch.chunk: first half)
    beta = sv[:, C:].reshape(R, 1)

    x_rows = x.reshape(R, HW)
    rows = _pick_rows(R, HW, x.dtype.itemsize)
    grid = (R // rows,)

    cost = pl.CostEstimate(
        flops=7 * R * HW,
        transcendentals=R,
        bytes_accessed=2 * R * HW * x.dtype.itemsize + 2 * R * 4,
    )

    out_rows = pl.pallas_call(
        adain_rows_kernel,
        out_shape=jax.ShapeDtypeStruct((R, HW), x.dtype),
        grid_spec=pltpu.PrefetchScalarGridSpec(
            num_scalar_prefetch=0,
            grid=grid,
            in_specs=[
                pl.BlockSpec((rows, HW), lambda i: (i, 0)),   # x rows (lane-dense)
                pl.BlockSpec((rows, 1), lambda i: (i, 0)),    # 1 + gamma per row
                pl.BlockSpec((rows, 1), lambda i: (i, 0)),    # beta per row
            ],
            out_specs=pl.BlockSpec((rows, HW), lambda i: (i, 0)),
        ),
        compiler_params=pltpu.CompilerParams(
            dimension_semantics=("parallel",),
        ),
        cost_estimate=cost,
    )(x_rows, g1, beta)
    return out_rows.reshape(B, C, H, W)


# ----------------------------------------------------------------------------
# Conv_Block forward (non-AdaIN pieces use standard XLA ops)
# ----------------------------------------------------------------------------
def reflection_pad2d(x, pad=1):
    return jnp.pad(x, ((0, 0), (0, 0), (pad, pad), (pad, pad)), mode="reflect")


def conv3x3(x, w, b):
    y = jax.lax.conv_general_dilated(
        x, w, window_strides=(1, 1), padding="VALID",
        dimension_numbers=("NCHW", "OIHW", "NCHW"))
    return y + b.reshape(1, -1, 1, 1)


def bilinear_resize(x, scale):
    B, C, H, W = x.shape
    return jax.image.resize(x, (B, C, int(H * scale), int(W * scale)), method="bilinear")


def conv_block_forward(params, x, style, resample="upsample", adain_fn=adain_pallas):
    if resample == "downsample":
        x = bilinear_resize(x, 0.5)
    elif resample == "upsample":
        x = bilinear_resize(x, 2.0)
    else:
        raise ValueError(resample)
    # block1: ReflectionPad2d(1) -> Conv2d(Ci, Ci, 3) -> ReLU   (use_noise=False)
    x = jnp.maximum(conv3x3(reflection_pad2d(x), params["w1"], params["b1"]), 0.0)
    x = adain_fn(x, style, params["aff1_w"], params["aff1_b"])
    # block2: ReflectionPad2d(1) -> Conv2d(Ci, Co, 3) -> ReLU
    x = jnp.maximum(conv3x3(reflection_pad2d(x), params["w2"], params["b2"]), 0.0)
    x = adain_fn(x, style, params["aff2_w"], params["aff2_b"])
    return x, style


# ----------------------------------------------------------------------------
# Pure-JAX reference (mirrors the PyTorch forward)
# ----------------------------------------------------------------------------
def adain_reference(x, style, w, b):
    B, C, H, W = x.shape
    sv = style @ w + b                                   # (B, 2C)
    gamma = sv[:, :C].reshape(B, C, 1, 1)
    beta = sv[:, C:].reshape(B, C, 1, 1)
    mean = jnp.mean(x, axis=(2, 3), keepdims=True)
    var = jnp.mean((x - mean) ** 2, axis=(2, 3), keepdims=True)
    x_norm = (x - mean) / jnp.sqrt(var + EPS)
    return (1.0 + gamma) * x_norm + beta


def conv_block_reference(params, x, style, resample="upsample"):
    return conv_block_forward(params, x, style, resample=resample, adain_fn=adain_reference)


# ----------------------------------------------------------------------------
if __name__ == "__main__":
    # Small shapes consistent with the module.
    B, Ci, Co, H, W = 2, 4, 8, 16, 16
    style_dim = 8

    key = jax.random.PRNGKey(0)
    keys = jax.random.split(key, 10)

    x = jax.random.normal(keys[0], (B, Ci, H, W), dtype=jnp.float32)
    style = jax.random.normal(keys[1], (B, style_dim), dtype=jnp.float32)

    def uinit(k, shape, fan_in):
        bound = 1.0 / np.sqrt(fan_in)
        return jax.random.uniform(k, shape, minval=-bound, maxval=bound, dtype=jnp.float32)

    params = dict(
        # Conv2d(Ci, Ci, 3) and Conv2d(Ci, Co, 3), PyTorch-style uniform init
        w1=uinit(keys[2], (Ci, Ci, 3, 3), Ci * 9),
        b1=uinit(keys[3], (Ci,), Ci * 9),
        w2=uinit(keys[4], (Co, Ci, 3, 3), Ci * 9),
        b2=uinit(keys[5], (Co,), Ci * 9),
        # AdaIN affines: Linear(style_dim, 2*C)
        aff1_w=uinit(keys[6], (style_dim, 2 * Ci), style_dim),
        aff1_b=uinit(keys[7], (2 * Ci,), style_dim),
        aff2_w=uinit(keys[8], (style_dim, 2 * Co), style_dim),
        aff2_b=uinit(keys[9], (2 * Co,), style_dim),
    )

    out, _ = conv_block_forward(params, x, style, resample="upsample")
    out = jax.block_until_ready(out)

    ref, _ = conv_block_reference(params, x, style, resample="upsample")
    np.testing.assert_allclose(np.asarray(out), np.asarray(ref), rtol=1e-4, atol=1e-4)

    print("KERNEL_OK")
</pallas_src>

<mosaic_0001>
module attributes {stable_mosaic.version = 11 : i64} {
  func.func @adain_rows_kernel(%arg0: i32, %arg1: memref<8x1024xf32, #tpu.memory_space<vmem>>, %arg2: memref<8x1xf32, #tpu.memory_space<vmem>>, %arg3: memref<8x1xf32, #tpu.memory_space<vmem>>, %arg4: memref<8x1024xf32, #tpu.memory_space<vmem>>) attributes {dimension_semantics = [#tpu.dimension_semantics<parallel>], iteration_bounds = array<i64: 1>, scalar_prefetch = 0 : i64, scratch_operands = 0 : i64, tpu.core_type = #tpu.core_type<tc>, window_params = [{transform_indices = @transform_0, window_bounds = array<i64: 8, 1024>}, {transform_indices = @transform_1, window_bounds = array<i64: 8, 1>}, {transform_indices = @transform_2, window_bounds = array<i64: 8, 1>}, {transform_indices = @transform_3, window_bounds = array<i64: 8, 1024>}]} {
    %c0 = arith.constant 0 : index
    %c0_0 = arith.constant 0 : index
    %0 = vector.load %arg1[%c0, %c0_0] : memref<8x1024xf32, #tpu.memory_space<vmem>>, vector<8x1024xf32>
    %cst = arith.constant dense<0.000000e+00> : vector<8xf32>
    %1 = vector.multi_reduction <add>, %0, %cst [1] : vector<8x1024xf32> to vector<8xf32>
    %2 = vector.shape_cast %1 : vector<8xf32> to vector<8x1xf32>
    %3 = arith.mulf %0, %0 : vector<8x1024xf32>
    %cst_1 = arith.constant dense<0.000000e+00> : vector<8xf32>
    %4 = vector.multi_reduction <add>, %3, %cst_1 [1] : vector<8x1024xf32> to vector<8xf32>
    %5 = vector.shape_cast %4 : vector<8xf32> to vector<8x1xf32>
    %cst_2 = arith.constant 9.765625E-4 : f32
    %6 = vector.broadcast %cst_2 : f32 to vector<8x1xf32>
    %7 = arith.mulf %2, %6 : vector<8x1xf32>
    %cst_3 = arith.constant 9.765625E-4 : f32
    %8 = vector.broadcast %cst_3 : f32 to vector<8x1xf32>
    %9 = arith.mulf %5, %8 : vector<8x1xf32>
    %10 = arith.mulf %7, %7 : vector<8x1xf32>
    %11 = arith.subf %9, %10 : vector<8x1xf32>
    %cst_4 = arith.constant 0.000000e+00 : f32
    %12 = vector.broadcast %cst_4 : f32 to vector<8x1xf32>
    %13 = arith.maximumf %11, %12 : vector<8x1xf32>
    %cst_5 = arith.constant 9.99999974E-6 : f32
    %14 = vector.broadcast %cst_5 : f32 to vector<8x1xf32>
    %15 = arith.addf %13, %14 : vector<8x1xf32>
    %16 = math.rsqrt %15 : vector<8x1xf32>
    %c0_6 = arith.constant 0 : index
    %c0_7 = arith.constant 0 : index
    %17 = vector.load %arg2[%c0_6, %c0_7] : memref<8x1xf32, #tpu.memory_space<vmem>>, vector<8x1xf32>
    %18 = arith.mulf %17, %16 : vector<8x1xf32>
    %c0_8 = arith.constant 0 : index
    %c0_9 = arith.constant 0 : index
    %19 = vector.load %arg3[%c0_8, %c0_9] : memref<8x1xf32, #tpu.memory_space<vmem>>, vector<8x1xf32>
    %20 = arith.mulf %7, %18 : vector<8x1xf32>
    %21 = arith.subf %19, %20 : vector<8x1xf32>
    %22 = vector.broadcast %18 : vector<8x1xf32> to vector<8x1024xf32>
    %23 = arith.mulf %0, %22 : vector<8x1024xf32>
    %24 = vector.broadcast %21 : vector<8x1xf32> to vector<8x1024xf32>
    %25 = arith.addf %23, %24 : vector<8x1024xf32>
    %c0_10 = arith.constant 0 : index
    %c0_11 = arith.constant 0 : index
    %26 = vector.load %arg4[%c0_10, %c0_11] : memref<8x1024xf32, #tpu.memory_space<vmem>>, vector<8x1024xf32>
    tpu.vector_store %arg4[%c0_10, %c0_11], %25 {strides = array<i32>} : memref<8x1024xf32, #tpu.memory_space<vmem>>, vector<8x1024xf32>,
    return
  }
  func.func @transform_0(%arg0: i32) -> (i32, i32) {
    %c0_i32 = arith.constant 0 : i32
    %c0_i32_0 = arith.constant 0 : i32
    return %arg0, %c0_i32 : i32, i32
  }
  func.func @transform_1(%arg0: i32) -> (i32, i32) {
    %c0_i32 = arith.constant 0 : i32
    %c0_i32_0 = arith.constant 0 : i32
    return %arg0, %c0_i32 : i32, i32
  }
  func.func @transform_2(%arg0: i32) -> (i32, i32) {
    %c0_i32 = arith.constant 0 : i32
    %c0_i32_0 = arith.constant 0 : i32
    return %arg0, %c0_i32 : i32, i32
  }
  func.func @transform_3(%arg0: i32) -> (i32, i32) {
    %c0_i32 = arith.constant 0 : i32
    %c0_i32_0 = arith.constant 0 : i32
    return %arg0, %c0_i32 : i32, i32
  }
}

</mosaic_0001>

<bundles_post_ra>
// kernel: tpu_custom_call.1
= control target key start
LH: loop header
LB: loop body
LE: loop exit
PB: predicated region body
PF: predicated region fallthrough
CT: control target
= control target key end

     0   :  { %8 = vsyncpa [#allocation3], 0  ;;  %s208_s0 = inlined_call_operand.hbm [shape: f32[8,1024], index: 0, kind: input, shape index: {}]   ;;  %s209_s1 = inlined_call_operand.vmem [shape: f32[8,1], index: 1, kind: input, shape index: {}]   ;;  %s210_s2 = inlined_call_operand.vmem [shape: f32[8,1], index: 2, kind: input, shape index: {}]   ;;  %s211_s3 = inlined_call_operand.hbm [shape: f32[8,1024], index: 3, kind: output, shape index: {}]  }
   0x1   :  { %9 = vsyncpa [#allocation4], 0  ;;  %s173_s12 = smov [#allocation2]  }
   0x2   :  { %s16_s13 = sshll.u32 %s173_s12, 4  ;;  %s17_s13 = int_to_ptr.vmem [resolvable:$true] %s16_s13 }
   0x3   :  { %s137_s14 = scalar_lea.vmem %s17_s13, 1024  ;;  %p142_p1 = scmp.lt.s32.totalorder %s17_s13, %s17_s13 }
   0x4   :  { %p138_p0 = scmp.ne.s32.totalorder %s17_s13, %s137_s14  ;;  %p143_p2 = scmp.lt.s32.totalorder %s137_s14, %s137_s14 }
   0x6   :  { %p144_p3 = por %p143_p2, %p142_p1 }
   0x8   :  { %p145_p4 = pnand %p144_p3, %p138_p0 }
   0xa   :  { %148 = shalt.err (!%p145_p4)
}
   0xb   :  { %19 = dma.hbm_to_vmem [thread:$0]  %s208_s0, 1024, %s17_s13, [#allocation3]  }
   0xc   :  { %169 = dma.done.wait [#allocation3], 1024  }
   0xd   :  { %170 = vsyncadd [#allocation3], 4294966272  ;;  %v27_v0 = vld [vmem:[#allocation2] sm:$0xff]  ;;  %v28_v1 = vld [vmem:[#allocation2 + $0x8] sm:$0xff]  ;;  %v174_v30 = vmov 0   ;;  %s175_s20 = smov [#allocation5]  }
   0xe   :  { %v29_v2 = vld [vmem:[#allocation2 + $0x10] sm:$0xff]  ;;  %v35_v3 = vadd.f32 %v28_v1, %v27_v0  ;;  %v44_v4 = vmul.f32 %v27_v0, %v27_v0  ;;  %v45_v5 = vmul.f32 %v28_v1, %v28_v1  ;;  %v30_v7 = vld [vmem:[#allocation2 + $0x18] sm:$0xff]  ;;  %v31_v11 = vld [vmem:[#allocation2 + $0x20] sm:$0xff]  ;;  %125 = vset.pattern.permute.xlu1 %v174_v30  ;;  %126 = vset.pattern.permute.xlu0 %v174_v30  ;;  %s113_s21 = sshll.u32 %s175_s20, 4  ;;  %s114_s21 = int_to_ptr.vmem [resolvable:$true] %s113_s21 }
   0xf   :  { %v46_v6 = vmul.f32 %v29_v2, %v29_v2  ;;  %v47_v9 = vmul.f32 %v30_v7, %v30_v7  ;;  %v48_v13 = vmul.f32 %v31_v11, %v31_v11  ;;  %v32_v15 = vld [vmem:[#allocation2 + $0x28] sm:$0xff]  ;;  %v33_v19 = vld [vmem:[#allocation2 + $0x30] sm:$0xff]  ;;  %v34_v23 = vld [vmem:[#allocation2 + $0x38] sm:$0xff]  ;;  %p154_p6 = scmp.lt.s32.totalorder %s114_s21, %s114_s21 }
  0x10   :  { %v36_v8 = vadd.f32 %v35_v3, %v29_v2  ;;  %v52_v10 = vadd.f32 %v45_v5, %v44_v4  ;;  %v49_v17 = vmul.f32 %v32_v15, %v32_v15  ;;  %v50_v21 = vmul.f32 %v33_v19, %v33_v19  ;;  %v68_v39 = vld [vmem:[%s209_s1] sm:$0xff]  ;;  %s149_s1 = scalar_lea.vmem %s114_s21, 1024 }
  0x11   :  { %v51_v25 = vmul.f32 %v34_v23, %v34_v23  ;;  %v70_v42 = vld [vmem:[%s210_s2] sm:$0xff]  ;;  %p150_p5 = scmp.ne.s32.totalorder %s114_s21, %s149_s1  ;;  %p155_p7 = scmp.lt.s32.totalorder %s149_s1, %s149_s1 }
  0x12   :  { %v37_v12 = vadd.f32 %v36_v8, %v30_v7  ;;  %v53_v14 = vadd.f32 %v52_v10, %v46_v6 }
  0x13   :  { %p156_p8 = por %p155_p7, %p154_p6 }
  0x14   :  { %v38_v16 = vadd.f32 %v37_v12, %v31_v11  ;;  %v54_v18 = vadd.f32 %v53_v14, %v47_v9 }
  0x15   :  { %p157_p9 = pnand %p156_p8, %p150_p5 }
  0x16   :  { %v39_v20 = vadd.f32 %v38_v16, %v32_v15  ;;  %v55_v22 = vadd.f32 %v54_v18, %v48_v13 }
  0x18   :  { %v40_v24 = vadd.f32 %v39_v20, %v33_v19  ;;  %v56_v26 = vadd.f32 %v55_v22, %v49_v17 }
  0x1a   :  { %v41_v27 = vadd.f32 %v40_v24, %v34_v23  ;;  %v57_v28 = vadd.f32 %v56_v26, %v50_v21 }
  0x1c   :  { %42 = vadd.xlane.f32.xlu0 %v41_v27  ;;  %v58_v29 = vadd.f32 %v57_v28, %v51_v25 }
  0x20   :  { %59 = vadd.xlane.f32.xlu0 %v58_v29 }
  0xa5   :  { %v43_v31 = vpop.xlane.xlu0 %42 }
  0xa6   :  { %v61_v32 = vmul.f32 0.0009765625, %v43_v31 }
  0xa8   :  { %v63_v34 = vmul.f32 %v61_v32, %v61_v32 }
  0xa9   :  { %v60_v33 = vpop.xlane.xlu0 %59 }
  0xaa   :  { %v62_v35 = vmul.f32 0.0009765625, %v60_v33 }
  0xac   :  { %v64_v36 = vsub.f32 %v62_v35, %v63_v34 }
  0xae   :  { %v65_v37 = vmax.f32 %v64_v36, 0.0 }
  0xb0   :  { %v66_v38 = vadd.f32 1e-05, %v65_v37 }
  0xb2   :  { %127 = vrsqrt.f32 %v66_v38 }
  0xbf   :  { %v128_v40 = vpop.eup %127 }
  0xc0   :  { %v69_v41 = vmul.f32 %v128_v40, %v68_v39 }
  0xc2   :  { %75 = vperm.xlu1 %125, %v69_v41   ;;  %v71_v43 = vmul.f32 %v69_v41, %v61_v32 }
  0xc4   :  { %v72_v44 = vsub.f32 %v70_v42, %v71_v43 }
  0xc6   :  { %88 = vperm.xlu1 %125, %v72_v44  }
 0x13d   :  { %v76_v45 = vpop.permute.xlu1 %75 }
 0x13e   :  { %v78_v46 = vmul.f32 %v76_v45, %v27_v0  ;;  %v79_v47 = vmul.f32 %v76_v45, %v28_v1  ;;  %v80_v48 = vmul.f32 %v76_v45, %v29_v2  ;;  %v81_v49 = vmul.f32 %v76_v45, %v30_v7 }
 0x13f   :  { %v82_v50 = vmul.f32 %v76_v45, %v31_v11  ;;  %v83_v51 = vmul.f32 %v76_v45, %v32_v15  ;;  %v84_v52 = vmul.f32 %v76_v45, %v33_v19  ;;  %v85_v53 = vmul.f32 %v76_v45, %v34_v23 }
 0x141   :  { %v89_v54 = vpop.permute.xlu1 %88 }
 0x142   :  { %v91_v55 = vadd.f32 %v89_v54, %v78_v46  ;;  %v92_v56 = vadd.f32 %v89_v54, %v79_v47  ;;  %v93_v57 = vadd.f32 %v89_v54, %v80_v48  ;;  %v94_v58 = vadd.f32 %v89_v54, %v81_v49 }
 0x143   :  { %v95_v59 = vadd.f32 %v89_v54, %v82_v50  ;;  %v96_v60 = vadd.f32 %v89_v54, %v83_v51  ;;  %v97_v61 = vadd.f32 %v89_v54, %v84_v52  ;;  %v98_v62 = vadd.f32 %v89_v54, %v85_v53 }
 0x144   :  { %99 = vst [vmem:[#allocation5] sm:$0xff] %v91_v55  ;;  %100 = vst [vmem:[#allocation5 + $0x8] sm:$0xff] %v92_v56 }
 0x145   :  { %101 = vst [vmem:[#allocation5 + $0x10] sm:$0xff] %v93_v57  ;;  %102 = vst [vmem:[#allocation5 + $0x18] sm:$0xff] %v94_v58 }
 0x146   :  { %103 = vst [vmem:[#allocation5 + $0x20] sm:$0xff] %v95_v59  ;;  %104 = vst [vmem:[#allocation5 + $0x28] sm:$0xff] %v96_v60 }
 0x147   :  { %105 = vst [vmem:[#allocation5 + $0x30] sm:$0xff] %v97_v61  ;;  %106 = vst [vmem:[#allocation5 + $0x38] sm:$0xff] %v98_v62 }
 0x148   :  { %160 = shalt.err (!%p157_p9)
}
 0x149   :  { %116 = dma.vmem_to_hbm [thread:$0]  %s114_s21, 1024, %s211_s3, [#allocation4]  }
 0x14a   :  { %171 = dma.done.wait [#allocation4], 1024  }
 0x14b   :  { %172 = vsyncadd [#allocation4], 4294966272 }
 0x14c   :  { %120 = vsyncpa [#allocation3], 1 }
 0x14d   :  { %121 = vsyncpa [#allocation4], 1 }

</bundles_post_ra>
